<compile_context>
chip_gen: v6e
topology: v6e:2x2x1
jax: 0.10.0
libtpu: 0.0.40
codegen_flags: <defaults>
</compile_context>

<pallas_src>
import numpy as np
import jax
import jax.numpy as jnp
from jax import lax
from jax.experimental import pallas as pl
from jax.experimental.pallas import tpu as pltpu


_VMEM_LIMIT_BYTES = 32 * 1024 * 1024           # safe on v5e/v6e (128 MiB) and v7x (64 MiB)
_FAST_PATH_MAX_DIM = 2048                      # K, N bound for the single-block path
_FAST_PATH_MAX_WEIGHT_BYTES = 4 * 1024 * 1024  # full (N, K) f32 weight resident in VMEM


def _round_up(v, m):
    return ((v + m - 1) // m) * m


# ----------------------------- Pallas kernels ------------------------------ #

def _linear_small_kernel(x_ref, w_ref, b_ref, o_ref):
    """Full-K, full-N: o = x @ w.T + b for one (tm, N) output slab."""
    y = lax.dot_general(
        x_ref[...], w_ref[...],
        dimension_numbers=(((1,), (1,)), ((), ())),   # contract K of x with K of (N, K) weight
        preferred_element_type=jnp.float32,
    )
    o_ref[...] = (y + b_ref[...]).astype(o_ref.dtype)


def _make_tiled_kernel(K, tk, needs_mask):
    """One (tm, tn) output tile, accumulating over the K grid axis (axis 2).

    When K % tk != 0, the last K block is partial; Pallas leaves the OOB lanes
    of the input buffers unspecified, so both operands are masked to zero on
    those lanes (cheap VPU select, avoids a jnp.pad HBM pass over x and W).
    """
    def kernel(x_ref, w_ref, b_ref, o_ref, acc_ref):
        @pl.when(pl.program_id(2) == 0)
        def _():
            # Fold the bias into the accumulator init -> epilogue is a pure cast+store.
            acc_ref[...] = jnp.broadcast_to(b_ref[...], acc_ref.shape)

        x = x_ref[...]
        w = w_ref[...]
        if needs_mask:
            col = (lax.broadcasted_iota(jnp.int32, (1, tk), 1)
                   + pl.program_id(2) * tk)
            valid = col < K
            x = jnp.where(valid, x, 0.0)
            w = jnp.where(valid, w, 0.0)

        acc_ref[...] += lax.dot_general(
            x, w,
            dimension_numbers=(((1,), (1,)), ((), ())),   # x (tm, tk) · w (tn, tk)^T on the MXU
            preferred_element_type=jnp.float32,
        )

        @pl.when(pl.program_id(2) == pl.num_programs(2) - 1)
        def _():
            o_ref[...] = acc_ref[...].astype(o_ref.dtype)

    return kernel


# ------------------------------ Pallas wrappers ----------------------------- #

def _choose_tm_fast(M, K, N):
    """Pick an M tile: big enough to amortize per-step overhead (mem-bound regime
    favors large tiles), small enough that double-buffered (tm, K) + (tm, N) f32
    tiles stay ~<= 8 MiB, and split into >= 2 blocks when possible so both v7x
    TensorCores get work."""
    cap = (1 << 20) // max(K + N, 1)
    cap = max(8, min(1024, (cap // 8) * 8))
    if M <= 8:
        return M                      # block == full dim (allowed by layout rules)
    if M <= cap:
        return min(cap, _round_up(-(-M // 2), 8))
    return cap


def _linear_fast(x2d, weight, bias2d):
    M, K = x2d.shape
    N = weight.shape[0]
    tm = _choose_tm_fast(M, K, N)
    grid = (pl.cdiv(M, tm),)          # remainder M block handled by Pallas (OOB rows dropped)
    cost = pl.CostEstimate(flops=2 * M * N * K, transcendentals=0,
                           bytes_accessed=4 * (M * K + N * K + M * N + N))
    return pl.pallas_call(
        _linear_small_kernel,
        out_shape=jax.ShapeDtypeStruct((M, N), jnp.float32),
        grid=grid,
        in_specs=[
            pl.BlockSpec((tm, K), lambda i: (i, 0)),   # x slab (full K, no padding)
            pl.BlockSpec((N, K), lambda i: (0, 0)),    # full weight, VMEM-resident, (N, K) layout
            pl.BlockSpec((1, N), lambda i: (0, 0)),    # bias row
        ],
        out_specs=pl.BlockSpec((tm, N), lambda i: (i, 0)),
        compiler_params=pltpu.CompilerParams(
            dimension_semantics=("parallel",),
            vmem_limit_bytes=_VMEM_LIMIT_BYTES,
        ),
        cost_estimate=cost,
    )(x2d, weight, bias2d)


def _linear_general(x2d, weight, bias2d, *, tm, tn, tk):
    M, K = x2d.shape
    N = weight.shape[0]

    # Sanitize tiles against the (8, 128) layout rules (full-dim blocks are always legal).
    tm = M if M <= tm else _round_up(tm, 8)
    tn = N if N <= tn else _round_up(tn, 128)
    tk = _round_up(min(tk, _round_up(K, 128)), 128)

    nk = pl.cdiv(K, tk)
    needs_mask = (K % tk) != 0        # ragged K tail -> in-kernel mask, no HBM pad pass

    grid = (pl.cdiv(M, tm), pl.cdiv(N, tn), nk)
    cost = pl.CostEstimate(flops=2 * M * N * K, transcendentals=0,
                           bytes_accessed=4 * (M * K + N * K + M * N + N))
    kernel = _make_tiled_kernel(K, tk, needs_mask)
    return pl.pallas_call(
        kernel,
        out_shape=jax.ShapeDtypeStruct((M, N), jnp.float32),
        grid=grid,
        in_specs=[
            pl.BlockSpec((tm, tk), lambda i, j, k: (i, k)),   # x tile
            pl.BlockSpec((tn, tk), lambda i, j, k: (j, k)),   # weight tile in (N, K) layout
            pl.BlockSpec((1, tn), lambda i, j, k: (0, j)),    # bias tile
        ],
        out_specs=pl.BlockSpec((tm, tn), lambda i, j, k: (i, j)),
        scratch_shapes=[pltpu.VMEM((tm, tn), jnp.float32)],
        compiler_params=pltpu.CompilerParams(
            dimension_semantics=("parallel", "parallel", "arbitrary"),
            vmem_limit_bytes=_VMEM_LIMIT_BYTES,
        ),
        cost_estimate=cost,
    )(x2d, weight, bias2d)


def pallas_linear(x2d, weight, bias, *, force_general=False, tm=256, tn=256, tk=512):
    """PyTorch nn.Linear semantics on a flattened slab: y = x2d @ weight.T + bias.

    x2d:    (M, K) f32
    weight: (N, K) f32 (native nn.Linear layout; never transposed in HBM)
    bias:   (N,)   f32 (zeros when the module has bias=False)
    returns (M, N) f32
    """
    # TODO(synk): an optional bf16-input / f32-accumulate MXU path (3-4x on v6e/v7x)
    # is deliberately skipped to preserve f32 numerics vs the PyTorch reference.
    x2d = x2d.astype(jnp.float32)
    weight = weight.astype(jnp.float32)
    M, K = x2d.shape
    N, K2 = weight.shape
    assert K == K2
    bias2d = bias.astype(jnp.float32).reshape(1, N)

    small = (not force_general
             and K <= _FAST_PATH_MAX_DIM
             and N <= _FAST_PATH_MAX_DIM
             and N * K * 4 <= _FAST_PATH_MAX_WEIGHT_BYTES)
    if small:
        return _linear_fast(x2d, weight, bias2d)
    return _linear_general(x2d, weight, bias2d, tm=tm, tn=tn, tk=tk)


# --------------------------- Module re-implementation ----------------------- #

class LinearAlongDims1:
    """JAX/Pallas port of the PyTorch LinearAlongDims1 module."""

    def __init__(self, num_dims, dims, input_sizes, output_sizes,
                 bias=True, dropout=None, key=None):
        # TODO(synk): `dropout` is accepted by the PyTorch __init__ but never
        # used in forward(); it is ignored here as well.
        if isinstance(dims, int):
            dims = [dims]
        if isinstance(input_sizes, int):
            input_sizes = [input_sizes]
        if isinstance(output_sizes, int):
            output_sizes = [output_sizes]
        order = np.argsort(dims)
        self.dims = [dims[j] for j in order]
        self.input_sizes = [input_sizes[j] for j in order]
        self.output_sizes = [output_sizes[j] for j in order]
        self.num_dims = num_dims

        perm = list(range(num_dims))
        for d in reversed(self.dims):
            perm = perm[:d] + perm[d + 1:] + [perm[d]]
        self.perm = perm
        self.inv_perm = [int(v) for v in np.argsort(perm)]

        output_view = num_dims * [1]
        for i, d in enumerate(self.dims):
            output_view[d] = self.output_sizes[i]
        output_view = [output_view[j] for j in self.perm]
        self.output_view = output_view

        in_features = int(np.prod(self.input_sizes))
        out_features = int(np.prod(self.output_sizes))

        # Deterministic parameter init (mimics nn.Linear default U(-1/sqrt(fan_in), ..)).
        if key is None:
            key = jax.random.PRNGKey(42)
        kw, kb = jax.random.split(key)
        bound = 1.0 / np.sqrt(in_features)
        self.weight = jax.random.uniform(
            kw, (out_features, in_features), jnp.float32, -bound, bound)
        if bias:
            self.bias = jax.random.uniform(
                kb, (out_features,), jnp.float32, -bound, bound)
        else:
            self.bias = jnp.zeros((out_features,), jnp.float32)

        # One jit around pre-transpose + Pallas matmul + post-transpose so the
        # layout plumbing fuses with the kernel dispatch.
        self._forward_jit = jax.jit(self._forward)

    # ---- glue (pure JAX) around the Pallas matmul hot path ----
    # TODO(synk): when the kept dims are contiguous, this transpose/reshape could
    # be fused into the kernel via the x BlockSpec index_map to save an HBM pass;
    # in general (kept dims split around the mixed dims, as here) it is a true
    # transpose and stays in XLA.
    def _pre(self, x):
        x = jnp.transpose(x, self.perm)
        n_keep = self.num_dims - len(self.dims)
        lead_shape = x.shape[:n_keep]
        x2d = x.reshape(int(np.prod(lead_shape)), -1)  # flatten mixed dims (row-major)
        return x2d, lead_shape

    def _post(self, y2d, lead_shape):
        y = y2d.reshape(*lead_shape, *self.output_view[-len(self.dims):])
        return jnp.transpose(y, self.inv_perm)

    def _forward(self, x, weight, bias):
        x2d, lead_shape = self._pre(x)
        y2d = pallas_linear(x2d, weight, bias)
        return self._post(y2d, lead_shape)

    def __call__(self, x):
        return self._forward_jit(x, self.weight, self.bias)

    def reference(self, x):
        """Pure-JAX reference (no Pallas) for correctness checking."""
        x2d, lead_shape = self._pre(x)
        y2d = jnp.dot(x2d, self.weight.T, precision=lax.Precision.HIGHEST) + self.bias
        return self._post(y2d, lead_shape)


# ---------------------------------- main ------------------------------------ #

if __name__ == "__main__":
    key = jax.random.PRNGKey(0)
    kx, kp, kx2, kp2, kg1, kg2 = jax.random.split(key, 6)

    # Test 1 — module regime (fast path, no padding, full-K blocks):
    # x is (B, C, H, W) = (2, 4, 8, 16); the linear mixes dims (1, 2),
    # mapping (C, H) = (4, 8) -> (6, 10).  Output shape: (2, 6, 10, 16).
    B, C, H, W = 2, 4, 8, 16
    x = jax.random.normal(kx, (B, C, H, W), dtype=jnp.float32)
    mod = LinearAlongDims1(
        num_dims=4, dims=[1, 2],
        input_sizes=[C, H], output_sizes=[6, 10],
        bias=True, key=kp,
    )
    y = mod(x)
    jax.block_until_ready(y)
    y_ref = mod.reference(x)
    assert y.shape == (B, 6, 10, W), y.shape
    assert jnp.allclose(y, y_ref, atol=1e-4, rtol=1e-4), "fast path mismatch"

    # Test 2 — fast path with a partial (remainder) M block: M = 5*10 = 50.
    x2 = jax.random.normal(kx2, (5, 4, 8, 10), dtype=jnp.float32)
    mod2 = LinearAlongDims1(
        num_dims=4, dims=[1, 2],
        input_sizes=[4, 8], output_sizes=[6, 10],
        bias=True, key=kp2,
    )
    y2 = mod2(x2)
    jax.block_until_ready(y2)
    assert jnp.allclose(y2, mod2.reference(x2), atol=1e-4, rtol=1e-4), \
        "fast path (M remainder) mismatch"

    # Test 3 — general K-accumulation path, K divisible by tk (no K mask).
    k3 = jax.random.split(kg1, 3)
    xg = jax.random.normal(k3[0], (128, 512), dtype=jnp.float32)
    wg = jax.random.normal(k3[1], (256, 512), dtype=jnp.float32) * 0.05
    bg = jax.random.normal(k3[2], (256,), dtype=jnp.float32)
    yg = pallas_linear(xg, wg, bg, force_general=True, tm=64, tn=128, tk=256)
    jax.block_until_ready(yg)
    yg_ref = lax.dot_general(xg, wg, (((1,), (1,)), ((), ())),
                             precision=lax.Precision.HIGHEST) + bg
    assert jnp.allclose(yg, yg_ref, atol=1e-3, rtol=1e-3), "general path mismatch"

    # Test 4 — general path with ragged M, N and K (in-kernel masked K tail,
    # no jnp.pad HBM pass): K = 320 with tk = 128 -> last K block is partial.
    k4 = jax.random.split(kg2, 3)
    xm = jax.random.normal(k4[0], (96, 320), dtype=jnp.float32)
    wm = jax.random.normal(k4[1], (200, 320), dtype=jnp.float32) * 0.05
    bm = jax.random.normal(k4[2], (200,), dtype=jnp.float32)
    ym = pallas_linear(xm, wm, bm, force_general=True, tm=64, tn=128, tk=128)
    jax.block_until_ready(ym)
    ym_ref = lax.dot_general(xm, wm, (((1,), (1,)), ((), ())),
                             precision=lax.Precision.HIGHEST) + bm
    assert jnp.allclose(ym, ym_ref, atol=1e-3, rtol=1e-3), \
        "general path (masked K tail) mismatch"

    print("KERNEL_OK")
</pallas_src>

<mosaic_0001>
module attributes {stable_mosaic.version = 11 : i64} {
  func.func @_linear_small_kernel(%arg0: i32, %arg1: memref<16x32xf32, #tpu.memory_space<vmem>>, %arg2: memref<60x32xf32, #tpu.memory_space<vmem>>, %arg3: memref<1x60xf32, #tpu.memory_space<vmem>>, %arg4: memref<16x60xf32, #tpu.memory_space<vmem>>) attributes {dimension_semantics = [#tpu.dimension_semantics<parallel>], iteration_bounds = array<i64: 2>, scalar_prefetch = 0 : i64, scratch_operands = 0 : i64, tpu.core_type = #tpu.core_type<tc>, window_params = [{transform_indices = @transform_0, window_bounds = array<i64: 16, 32>}, {pipeline_mode = #tpu.pipeline_mode<synchronous>, transform_indices = @transform_1, window_bounds = array<i64: 60, 32>}, {pipeline_mode = #tpu.pipeline_mode<synchronous>, transform_indices = @transform_2, window_bounds = array<i64: 1, 60>}, {transform_indices = @transform_3, window_bounds = array<i64: 16, 60>}]} {
    %c0 = arith.constant 0 : index
    %c0_0 = arith.constant 0 : index
    %0 = vector.load %arg1[%c0, %c0_0] : memref<16x32xf32, #tpu.memory_space<vmem>>, vector<16x32xf32>
    %c0_1 = arith.constant 0 : index
    %c0_2 = arith.constant 0 : index
    %1 = vector.load %arg2[%c0_1, %c0_2] : memref<60x32xf32, #tpu.memory_space<vmem>>, vector<60x32xf32>
    %cst = arith.constant dense<0.000000e+00> : vector<16x60xf32>
    %2 = tpu.matmul %0, %1, %cst {dimension_numbers = #tpu.dot_dimension_numbers<[1], [1], [0], [0], [0, 0, 1, 0], [], []>} : vector<16x32xf32>, vector<60x32xf32>, vector<16x60xf32> -> vector<16x60xf32>
    %c0_3 = arith.constant 0 : index
    %c0_4 = arith.constant 0 : index
    %3 = vector.load %arg3[%c0_3, %c0_4] : memref<1x60xf32, #tpu.memory_space<vmem>>, vector<1x60xf32>
    %4 = vector.broadcast %3 : vector<1x60xf32> to vector<16x60xf32>
    %5 = arith.addf %2, %4 : vector<16x60xf32>
    %c0_5 = arith.constant 0 : index
    %c0_6 = arith.constant 0 : index
    %6 = vector.load %arg4[%c0_5, %c0_6] : memref<16x60xf32, #tpu.memory_space<vmem>>, vector<16x60xf32>
    tpu.vector_store %arg4[%c0_5, %c0_6], %5 {strides = array<i32>} : memref<16x60xf32, #tpu.memory_space<vmem>>, vector<16x60xf32>,
    return
  }
  func.func @transform_0(%arg0: i32) -> (i32, i32) {
    %c0_i32 = arith.constant 0 : i32
    %c0_i32_0 = arith.constant 0 : i32
    return %arg0, %c0_i32 : i32, i32
  }
  func.func @transform_1(%arg0: i32) -> (i32, i32) {
    %c0_i32 = arith.constant 0 : i32
    %c0_i32_0 = arith.constant 0 : i32
    %c0_i32_1 = arith.constant 0 : i32
    return %c0_i32, %c0_i32_0 : i32, i32
  }
  func.func @transform_2(%arg0: i32) -> (i32, i32) {
    %c0_i32 = arith.constant 0 : i32
    %c0_i32_0 = arith.constant 0 : i32
    %c0_i32_1 = arith.constant 0 : i32
    return %c0_i32, %c0_i32_0 : i32, i32
  }
  func.func @transform_3(%arg0: i32) -> (i32, i32) {
    %c0_i32 = arith.constant 0 : i32
    %c0_i32_0 = arith.constant 0 : i32
    return %arg0, %c0_i32 : i32, i32
  }
}

</mosaic_0001>

<bundles_post_ra>
// kernel: _forward.1
= control target key start
LH: loop header
LB: loop body
LE: loop exit
PB: predicated region body
PF: predicated region fallthrough
CT: control target
= control target key end

     0   :  { %s443_s12 = smov 0   ;;  %s508_s0 = inlined_call_operand.vmem [shape: f32[32,32], index: 0, kind: input, shape index: {}]   ;;  %s509_s1 = inlined_call_operand.vmem [shape: f32[60,32], index: 1, kind: input, shape index: {}]   ;;  %s510_s2 = inlined_call_operand.vmem [shape: f32[1,60], index: 2, kind: input, shape index: {}]   ;;  %s511_s3 = inlined_call_operand.vmem [shape: f32[32,60], index: 3, kind: output, shape index: {}]  }
   0x1 LB: > { %s356_s13 = sadd.s32 4294967295, %s421_s12   ;;  %p360_p0 = scmp.ge.s32.totalorder %s421_s12, 1  ;;  %s421_s12 = sphi %s443_s12, %s13_s12  }
   0x2   : > { %p138_p1 = scmp.lt.s32.totalorder %s421_s12, 3 }
   0x4   : > { %p139_p2 = pnand %p360_p0, %p138_p1 }
   0x5   : > { %s361_s18 = sshll.u32 (!%p139_p2), %s356_s13, 1 }
   0x6   : > { %142 = sbr.rel (%p139_p2) target bundleno = 242 (0xf2), region = 32  ;;  %p163_p3 = scmp.lt.s32.totalorder (!%p139_p2), %s361_s18, 3 }
   0xb   : > { %v183_v0 = vld [vmem:[%s509_s1 + $0x38] sm:$0xf]  ;;  %vm191_vm0 = vcmask 261120   ;;  %v182_v1 = vld [vmem:[%s509_s1 + $0x30] sm:$0xff]  ;;  %s513_s18 = smov (!%p163_p3, %s361_s18), 3  ;;  %v181_v2 = vld [vmem:[%s509_s1 + $0x28] sm:$0xff] }
   0xc   : > { %388 = vmatprep.subr.msk.mxu0 %vm191_vm0, %v183_v0  ;;  %s362_s21 = sshll.u32 %s513_s18, 3  ;;  %v180_v4 = vld [vmem:[%s509_s1 + $0x20] sm:$0xff]  ;;  %v179_v5 = vld [vmem:[%s509_s1 + $0x18] sm:$0xff]  ;;  %v178_v6 = vld [vmem:[%s509_s1 + $0x10] sm:$0xff]  ;;  %vm297_vm1 = vcmask 490496  }
   0xd   : > { %389 = vmatpush3.xpose.msk.msra.mxu0 %vm191_vm0, %v183_v0  ;;  %s166_s24 = scalar_lea.vmem %s508_s0, %s362_s21  ;;  %v177_v7 = vld [vmem:[%s509_s1 + $0x8] sm:$0xff]  ;;  %v176_v8 = vld [vmem:[%s509_s1] sm:$0xff]  ;;  %s172_s13 = scalar_lea.vmem %s511_s3, %s362_s21 }
   0xe   : > { %390 = vmatprep.subr.msk.mxu0 %vm191_vm0, %v182_v1  ;;  %v174_v3 = vld [vmem:[%s166_s24] sm:$0xff]  ;;  %v175_v9 = vld [vmem:[%s166_s24 + $0x8] sm:$0xff] }
   0xf   : > { %404 = vmatprep.mubr.msk.f32.mxu0 %vm191_vm0, %v174_v3  ;;  %v365_v11 = vld [vmem:[%s510_s2] ss:$0 sm:$0xff] }
  0x11   : > { %391 = vmatpush3.xpose.msk.msra.mxu0 %vm191_vm0, %v182_v1 }
  0x12   : > { %392 = vmatprep.subr.msk.mxu0 %vm191_vm0, %v181_v2 }
  0x15   : > { %393 = vmatpush3.xpose.msk.msra.mxu0 %vm191_vm0, %v181_v2 }
  0x16   : > { %394 = vmatprep.subr.msk.mxu0 %vm191_vm0, %v180_v4 }
  0x19   : > { %395 = vmatpush3.xpose.msk.msra.mxu0 %vm191_vm0, %v180_v4 }
  0x1a   : > { %396 = vmatprep.subr.msk.mxu0 %vm191_vm0, %v179_v5 }
  0x1d   : > { %397 = vmatpush3.xpose.msk.msra.mxu0 %vm191_vm0, %v179_v5 }
  0x1e   : > { %398 = vmatprep.subr.msk.mxu0 %vm191_vm0, %v178_v6 }
  0x21   : > { %399 = vmatpush3.xpose.msk.msra.mxu0 %vm191_vm0, %v178_v6 }
  0x22   : > { %400 = vmatprep.subr.msk.mxu0 %vm191_vm0, %v177_v7 }
  0x25   : > { %401 = vmatpush3.xpose.msk.msra.mxu0 %vm191_vm0, %v177_v7 }
  0x26   : > { %402 = vmatprep.subr.msk.mxu0 %vm191_vm0, %v176_v8 }
  0x29   : > { %403 = vmatpush3.xpose.msk.msra.mxu0 %vm191_vm0, %v176_v8 }
  0x2c   : > { %405 = vmatmul.mubr.msk.f32.vlgmr.msra.gmra.mxu0 %vm191_vm0, %v175_v9 }
  0xec   : > { %v406_v10 = vpop.f32.mrf.mxu0 }
  0xed   : > { %v294_v14 = vadd.f32 %v406_v10, %v365_v11 }
  0xee   : > { %v288_v12 = vpop.f32.mrf.mxu0 }
  0xef   : > { %v289_v13 = vadd.f32 %v365_v11, %v288_v12  ;;  %299 = vst.msk [vmem:[%s172_s13 + $0x8] sm:$0xff] %vm297_vm1, %v294_v14 }
  0xf1   : > { %298 = vst.msk [vmem:[%s172_s13] sm:$0xff] %vm297_vm1, %v289_v13 }
  0xf2 PF: > { %s13_s12 = sadd.s32 1, %s421_s12  }
  0xf3   : > { %p10_p4 = scmp.ge.s32.totalorder %s13_s12, 4  }
  0xf5   :  { %12 = sbr.rel (!%p10_p4) target bundleno = 1 (0x1), region = 62 }

</bundles_post_ra>
